<compile_context>
chip_gen: v6e
topology: v6e:2x2x1
jax: 0.10.0
libtpu: 0.0.40
codegen_flags: <defaults>
</compile_context>

<pallas_src>
import jax
import jax.numpy as jnp
from jax.experimental import pallas as pl
from jax.experimental.pallas import tpu as pltpu

# config (synthetic, deterministic)
HIDDEN = 32          # config.hidden_size
INTER = 64           # config.intermediate_size
NORM2_EPS = 1e-5     # torch nn.LayerNorm default
FFN_LN_EPS = 1e-6    # config.layer_norm_eps
LANES = 128


def _round8(n):
    return ((n + 7) // 8) * 8


def _layernorm(x, gamma, beta, eps):
    mu = jnp.mean(x, axis=-1, keepdims=True)
    var = jnp.mean((x - mu) ** 2, axis=-1, keepdims=True)
    return (x - mu) * jax.lax.rsqrt(var + eps) * gamma + beta


def gcap_cross_output_kernel(
    hs_ref, inp_ref,           # packed activation tiles (tile, P*H)
    wo_ref,                    # (P*H, P*H)   block-diag out_proj
    w13_ref,                   # (P*H, 2*P*I) block-diag [w1 | w3]
    w2_ref,                    # (P*I, P*H)   block-diag w2
    m2_ref,                    # (P*H, P*H)   per-token averaging matrix (1/H blocks)
    mf_ref,                    # (P*I, P*I)   per-token averaging matrix (1/I blocks)
    vh_ref,                    # (4, P*H)     rows: bo, norm2.gamma, norm2.beta, b2
    vi_ref,                    # (2, P*I)     rows: ffn_ln.gamma, ffn_ln.beta
    b13_ref,                   # (1, 2*P*I)   [b1 | b3]
    out_ref,                   # (tile, P*H)
):
    f32 = jnp.float32
    hs = hs_ref[...].astype(f32)
    x = inp_ref[...].astype(f32)

    bo = vh_ref[0:1, :]
    g2 = vh_ref[1:2, :]
    be2 = vh_ref[2:3, :]
    b2 = vh_ref[3:4, :]
    gf = vi_ref[0:1, :]
    bf = vi_ref[1:2, :]

    # residual 1: input_tensor + out_proj(hidden_states)
    x = x + jnp.dot(hs, wo_ref[...], preferred_element_type=f32) + bo

    # norm2: per-token segmented LayerNorm.  The averaging matmul broadcasts each token's
    # mean/variance across its own H lanes; everything stays lane-dense (no reshapes).
    mu = jnp.dot(x, m2_ref[...], preferred_element_type=f32)
    d = x - mu
    var = jnp.dot(d * d, m2_ref[...], preferred_element_type=f32)
    xn = d * jax.lax.rsqrt(var + NORM2_EPS) * g2 + be2

    # fused SwiGLU up-projection; h1 / h3 each occupy whole 128-lane groups.
    h13 = jnp.dot(xn, w13_ref[...], preferred_element_type=f32) + b13_ref[...]
    pi = h13.shape[-1] // 2
    h1 = h13[:, :pi]
    h3 = h13[:, pi:]
    h = (h1 * jax.nn.sigmoid(h1)) * h3            # SiLU(w1 x) * (w3 x)

    # ffn_ln: per-token segmented LayerNorm over I-wide groups.
    mu_f = jnp.dot(h, mf_ref[...], preferred_element_type=f32)
    df = h - mu_f
    var_f = jnp.dot(df * df, mf_ref[...], preferred_element_type=f32)
    hn = df * jax.lax.rsqrt(var_f + FFN_LN_EPS) * gf + bf

    # down projection + residual 2
    mlp_out = jnp.dot(hn, w2_ref[...], preferred_element_type=f32) + b2
    out_ref[...] = (x + mlp_out).astype(out_ref.dtype)


def pack_params(params, tokens_per_row=None):
    """One-time packing of the tiny (H=32 / I=64) weights into lane-dense, block-diagonal
    operands.  Call once at parameter-init time, not per forward call."""
    H = params["wo"].shape[0]
    I = params["w2"].shape[0]
    if tokens_per_row is None:
        tokens_per_row = max(1, LANES // H) if LANES % H == 0 else 1
    P = tokens_per_row
    eye = jnp.eye(P, dtype=jnp.float32)

    def bdiag(w):
        return jnp.kron(eye, w.astype(jnp.float32))

    def tile_v(v):
        return jnp.tile(v.astype(jnp.float32).reshape(1, -1), (1, P))

    w1p = bdiag(params["w1"])
    w3p = bdiag(params["w3"])
    return {
        "wo": bdiag(params["wo"]),                                        # (P*H, P*H)
        "w13": jnp.concatenate([w1p, w3p], axis=1),                       # (P*H, 2*P*I)
        "w2": bdiag(params["w2"]),                                        # (P*I, P*H)
        "b13": jnp.concatenate([tile_v(params["b1"]),
                                tile_v(params["b3"])], axis=1),           # (1, 2*P*I)
        "vh": jnp.concatenate([tile_v(params["bo"]), tile_v(params["g2"]),
                               tile_v(params["be2"]), tile_v(params["b2"])], axis=0),  # (4, P*H)
        "vi": jnp.concatenate([tile_v(params["gf"]),
                               tile_v(params["bf"])], axis=0),            # (2, P*I)
        "m2": jnp.kron(eye, jnp.full((H, H), 1.0 / H, jnp.float32)),      # (P*H, P*H)
        "mf": jnp.kron(eye, jnp.full((I, I), 1.0 / I, jnp.float32)),      # (P*I, P*I)
    }


def gcap_cross_output(hidden_states, input_tensor, packed, *, tile_rows=2048, io_dtype=None):
    """hidden_states, input_tensor: (B, S, H).  packed: output of pack_params()."""
    B, S, H = hidden_states.shape
    PH = packed["wo"].shape[0]
    PI = packed["w2"].shape[0]
    P = PH // H
    R = B * S

    out_dtype = jnp.promote_types(hidden_states.dtype, input_tensor.dtype)
    io_dt = out_dtype if io_dtype is None else io_dtype   # bf16 here halves HBM traffic

    hs2 = hidden_states.reshape(R, H)
    in2 = input_tensor.reshape(R, H)
    rem = (-R) % P
    if rem:  # only pad in the rare case the token count isn't a multiple of the pack factor
        hs2 = jnp.pad(hs2, ((0, rem), (0, 0)))
        in2 = jnp.pad(in2, ((0, rem), (0, 0)))
    rows = (R + rem) // P
    hs_p = hs2.reshape(rows, PH).astype(io_dt)
    in_p = in2.reshape(rows, PH).astype(io_dt)

    # Tile selection: big tiles to amortize per-step overhead; keep >=2 grid steps when
    # possible so v7x's two TensorCores both get work; ragged tails use Pallas'
    # partial-last-block handling (no padded copies of the activation slabs).
    tile_rows = max(8, _round8(tile_rows))
    if rows <= tile_rows:
        tile = _round8(pl.cdiv(rows, 2)) if rows >= 16 else rows
    else:
        tile = tile_rows
    n_tiles = pl.cdiv(rows, tile)

    row_spec = pl.BlockSpec((tile, PH), lambda i: (i, 0))
    inv = lambda a: pl.BlockSpec(a.shape, lambda i: (0, 0))   # loop-invariant (fetched once)

    out_p = pl.pallas_call(
        gcap_cross_output_kernel,
        out_shape=jax.ShapeDtypeStruct((rows, PH), io_dt),
        grid=(n_tiles,),
        in_specs=[
            row_spec,                 # hidden_states tile
            row_spec,                 # input_tensor tile
            inv(packed["wo"]),
            inv(packed["w13"]),
            inv(packed["w2"]),
            inv(packed["m2"]),
            inv(packed["mf"]),
            inv(packed["vh"]),
            inv(packed["vi"]),
            inv(packed["b13"]),
        ],
        out_specs=row_spec,
        compiler_params=pltpu.CompilerParams(dimension_semantics=("parallel",)),
    )(
        hs_p, in_p,
        packed["wo"], packed["w13"], packed["w2"],
        packed["m2"], packed["mf"],
        packed["vh"], packed["vi"], packed["b13"],
    )

    out = out_p.reshape(rows * P, H)
    if rem:
        out = out[:R]
    return out.reshape(B, S, H).astype(out_dtype)


def reference(hidden_states, input_tensor, params):
    hs = hidden_states.astype(jnp.float32)
    x = input_tensor.astype(jnp.float32)
    x = x + hs @ params["wo"] + params["bo"]
    xn = _layernorm(x, params["g2"], params["be2"], NORM2_EPS)
    h1 = xn @ params["w1"] + params["b1"]
    h3 = xn @ params["w3"] + params["b3"]
    h = (h1 * jax.nn.sigmoid(h1)) * h3
    hn = _layernorm(h, params["gf"], params["bf"], FFN_LN_EPS)
    return x + hn @ params["w2"] + params["b2"]


def init_params(key, H, I):
    ks = jax.random.split(key, 8)
    scale_h = 1.0 / jnp.sqrt(H)
    scale_i = 1.0 / jnp.sqrt(I)
    return {
        # weights stored as (in, out) = torch weight.T
        "wo": jax.random.normal(ks[0], (H, H), jnp.float32) * scale_h,
        "bo": jax.random.normal(ks[1], (1, H), jnp.float32) * 0.01,
        "g2": jnp.ones((1, H), jnp.float32),
        "be2": jnp.zeros((1, H), jnp.float32),
        "w1": jax.random.normal(ks[2], (H, I), jnp.float32) * scale_h,
        "b1": jax.random.normal(ks[3], (1, I), jnp.float32) * 0.01,
        "w3": jax.random.normal(ks[4], (H, I), jnp.float32) * scale_h,
        "b3": jax.random.normal(ks[5], (1, I), jnp.float32) * 0.01,
        "gf": jnp.ones((1, I), jnp.float32),
        "bf": jnp.zeros((1, I), jnp.float32),
        "w2": jax.random.normal(ks[6], (I, H), jnp.float32) * scale_i,
        "b2": jax.random.normal(ks[7], (1, H), jnp.float32) * 0.01,
    }


if __name__ == "__main__":
    key = jax.random.PRNGKey(0)
    k_hs, k_in, k_p = jax.random.split(key, 3)

    B, S = 2, 8
    hidden_states = jax.random.normal(k_hs, (B, S, HIDDEN), jnp.float32)
    input_tensor = jax.random.normal(k_in, (B, S, HIDDEN), jnp.float32)
    params = init_params(k_p, HIDDEN, INTER)
    packed = pack_params(params)   # one-time weight packing (hoisted out of the call path)

    out = gcap_cross_output(hidden_states, input_tensor, packed)
    out = jax.block_until_ready(out)

    ref = reference(hidden_states.reshape(-1, HIDDEN),
                    input_tensor.reshape(-1, HIDDEN), params).reshape(B, S, HIDDEN)
    assert jnp.allclose(out, ref, atol=1e-4, rtol=1e-4), "mismatch vs reference"

    print("KERNEL_OK")
</pallas_src>

<mosaic_0001>
module attributes {stable_mosaic.version = 11 : i64} {
  func.func @gcap_cross_output_kernel(%arg0: i32, %arg1: memref<4x128xf32, #tpu.memory_space<vmem>>, %arg2: memref<4x128xf32, #tpu.memory_space<vmem>>, %arg3: memref<128x128xf32, #tpu.memory_space<vmem>>, %arg4: memref<128x512xf32, #tpu.memory_space<vmem>>, %arg5: memref<256x128xf32, #tpu.memory_space<vmem>>, %arg6: memref<128x128xf32, #tpu.memory_space<vmem>>, %arg7: memref<256x256xf32, #tpu.memory_space<vmem>>, %arg8: memref<4x128xf32, #tpu.memory_space<vmem>>, %arg9: memref<2x256xf32, #tpu.memory_space<vmem>>, %arg10: memref<1x512xf32, #tpu.memory_space<vmem>>, %arg11: memref<4x128xf32, #tpu.memory_space<vmem>>) attributes {dimension_semantics = [#tpu.dimension_semantics<parallel>], iteration_bounds = array<i64: 1>, scalar_prefetch = 0 : i64, scratch_operands = 0 : i64, tpu.core_type = #tpu.core_type<tc>, window_params = [{transform_indices = @transform_0, window_bounds = array<i64: 4, 128>}, {transform_indices = @transform_1, window_bounds = array<i64: 4, 128>}, {pipeline_mode = #tpu.pipeline_mode<synchronous>, transform_indices = @transform_2, window_bounds = array<i64: 128, 128>}, {pipeline_mode = #tpu.pipeline_mode<synchronous>, transform_indices = @transform_3, window_bounds = array<i64: 128, 512>}, {pipeline_mode = #tpu.pipeline_mode<synchronous>, transform_indices = @transform_4, window_bounds = array<i64: 256, 128>}, {pipeline_mode = #tpu.pipeline_mode<synchronous>, transform_indices = @transform_5, window_bounds = array<i64: 128, 128>}, {pipeline_mode = #tpu.pipeline_mode<synchronous>, transform_indices = @transform_6, window_bounds = array<i64: 256, 256>}, {pipeline_mode = #tpu.pipeline_mode<synchronous>, transform_indices = @transform_7, window_bounds = array<i64: 4, 128>}, {pipeline_mode = #tpu.pipeline_mode<synchronous>, transform_indices = @transform_8, window_bounds = array<i64: 2, 256>}, {pipeline_mode = #tpu.pipeline_mode<synchronous>, transform_indices = @transform_9, window_bounds = array<i64: 1, 512>}, {transform_indices = @transform_10, window_bounds = array<i64: 4, 128>}]} {
    %c0 = arith.constant 0 : index
    %c0_0 = arith.constant 0 : index
    %0 = vector.load %arg1[%c0, %c0_0] : memref<4x128xf32, #tpu.memory_space<vmem>>, vector<4x128xf32>
    %c0_1 = arith.constant 0 : index
    %c0_2 = arith.constant 0 : index
    %1 = vector.load %arg2[%c0_1, %c0_2] : memref<4x128xf32, #tpu.memory_space<vmem>>, vector<4x128xf32>
    %c0_3 = arith.constant 0 : index
    %c0_4 = arith.constant 0 : index
    %2 = vector.load %arg8[%c0_3, %c0_4] : memref<4x128xf32, #tpu.memory_space<vmem>>, vector<1x128xf32>
    %c1 = arith.constant 1 : index
    %c0_5 = arith.constant 0 : index
    %3 = vector.load %arg8[%c1, %c0_5] : memref<4x128xf32, #tpu.memory_space<vmem>>, vector<1x128xf32>
    %c2 = arith.constant 2 : index
    %c0_6 = arith.constant 0 : index
    %4 = vector.load %arg8[%c2, %c0_6] : memref<4x128xf32, #tpu.memory_space<vmem>>, vector<1x128xf32>
    %c3 = arith.constant 3 : index
    %c0_7 = arith.constant 0 : index
    %5 = vector.load %arg8[%c3, %c0_7] : memref<4x128xf32, #tpu.memory_space<vmem>>, vector<1x128xf32>
    %c0_8 = arith.constant 0 : index
    %c0_9 = arith.constant 0 : index
    %6 = vector.load %arg9[%c0_8, %c0_9] : memref<2x256xf32, #tpu.memory_space<vmem>>, vector<1x256xf32>
    %c1_10 = arith.constant 1 : index
    %c0_11 = arith.constant 0 : index
    %7 = vector.load %arg9[%c1_10, %c0_11] : memref<2x256xf32, #tpu.memory_space<vmem>>, vector<1x256xf32>
    %c0_12 = arith.constant 0 : index
    %c0_13 = arith.constant 0 : index
    %8 = vector.load %arg3[%c0_12, %c0_13] : memref<128x128xf32, #tpu.memory_space<vmem>>, vector<128x128xf32>
    %cst = arith.constant dense<0.000000e+00> : vector<4x128xf32>
    %9 = tpu.matmul %0, %8, %cst {dimension_numbers = #tpu.dot_dimension_numbers<[1], [0], [0], [1], [0, 0, 1, 1], [], []>} : vector<4x128xf32>, vector<128x128xf32>, vector<4x128xf32> -> vector<4x128xf32>
    %10 = arith.addf %1, %9 : vector<4x128xf32>
    %11 = vector.broadcast %2 : vector<1x128xf32> to vector<4x128xf32>
    %12 = arith.addf %10, %11 : vector<4x128xf32>
    %c0_14 = arith.constant 0 : index
    %c0_15 = arith.constant 0 : index
    %13 = vector.load %arg6[%c0_14, %c0_15] : memref<128x128xf32, #tpu.memory_space<vmem>>, vector<128x128xf32>
    %cst_16 = arith.constant dense<0.000000e+00> : vector<4x128xf32>
    %14 = tpu.matmul %12, %13, %cst_16 {dimension_numbers = #tpu.dot_dimension_numbers<[1], [0], [0], [1], [0, 0, 1, 1], [], []>} : vector<4x128xf32>, vector<128x128xf32>, vector<4x128xf32> -> vector<4x128xf32>
    %15 = arith.subf %12, %14 : vector<4x128xf32>
    %16 = arith.mulf %15, %15 : vector<4x128xf32>
    %c0_17 = arith.constant 0 : index
    %c0_18 = arith.constant 0 : index
    %17 = vector.load %arg6[%c0_17, %c0_18] : memref<128x128xf32, #tpu.memory_space<vmem>>, vector<128x128xf32>
    %cst_19 = arith.constant dense<0.000000e+00> : vector<4x128xf32>
    %18 = tpu.matmul %16, %17, %cst_19 {dimension_numbers = #tpu.dot_dimension_numbers<[1], [0], [0], [1], [0, 0, 1, 1], [], []>} : vector<4x128xf32>, vector<128x128xf32>, vector<4x128xf32> -> vector<4x128xf32>
    %cst_20 = arith.constant 9.99999974E-6 : f32
    %19 = vector.broadcast %cst_20 : f32 to vector<4x128xf32>
    %20 = arith.addf %18, %19 : vector<4x128xf32>
    %21 = math.rsqrt %20 : vector<4x128xf32>
    %22 = arith.mulf %15, %21 : vector<4x128xf32>
    %23 = vector.broadcast %3 : vector<1x128xf32> to vector<4x128xf32>
    %24 = arith.mulf %22, %23 : vector<4x128xf32>
    %25 = vector.broadcast %4 : vector<1x128xf32> to vector<4x128xf32>
    %26 = arith.addf %24, %25 : vector<4x128xf32>
    %c0_21 = arith.constant 0 : index
    %c0_22 = arith.constant 0 : index
    %27 = vector.load %arg4[%c0_21, %c0_22] : memref<128x512xf32, #tpu.memory_space<vmem>>, vector<128x512xf32>
    %cst_23 = arith.constant dense<0.000000e+00> : vector<4x512xf32>
    %28 = tpu.matmul %26, %27, %cst_23 {dimension_numbers = #tpu.dot_dimension_numbers<[1], [0], [0], [1], [0, 0, 1, 1], [], []>} : vector<4x128xf32>, vector<128x512xf32>, vector<4x512xf32> -> vector<4x512xf32>
    %c0_24 = arith.constant 0 : index
    %c0_25 = arith.constant 0 : index
    %29 = vector.load %arg10[%c0_24, %c0_25] : memref<1x512xf32, #tpu.memory_space<vmem>>, vector<1x512xf32>
    %30 = vector.broadcast %29 : vector<1x512xf32> to vector<4x512xf32>
    %31 = arith.addf %28, %30 : vector<4x512xf32>
    %32 = vector.extract_strided_slice %31 {offsets = [0, 0], sizes = [4, 256], strides = [1, 1]} : vector<4x512xf32> to vector<4x256xf32>
    %33 = vector.extract_strided_slice %31 {offsets = [0, 256], sizes = [4, 256], strides = [1, 1]} : vector<4x512xf32> to vector<4x256xf32>
    %34 = arith.negf %32 : vector<4x256xf32>
    %35 = math.exp %34 : vector<4x256xf32>
    %cst_26 = arith.constant 1.000000e+00 : f32
    %36 = vector.broadcast %cst_26 : f32 to vector<4x256xf32>
    %37 = arith.addf %36, %35 : vector<4x256xf32>
    %38 = arith.divf %36, %37 : vector<4x256xf32>
    %39 = arith.mulf %32, %38 : vector<4x256xf32>
    %40 = arith.mulf %39, %33 : vector<4x256xf32>
    %c0_27 = arith.constant 0 : index
    %c0_28 = arith.constant 0 : index
    %41 = vector.load %arg7[%c0_27, %c0_28] : memref<256x256xf32, #tpu.memory_space<vmem>>, vector<256x256xf32>
    %cst_29 = arith.constant dense<0.000000e+00> : vector<4x256xf32>
    %42 = tpu.matmul %40, %41, %cst_29 {dimension_numbers = #tpu.dot_dimension_numbers<[1], [0], [0], [1], [0, 0, 1, 1], [], []>} : vector<4x256xf32>, vector<256x256xf32>, vector<4x256xf32> -> vector<4x256xf32>
    %43 = arith.subf %40, %42 : vector<4x256xf32>
    %44 = arith.mulf %43, %43 : vector<4x256xf32>
    %c0_30 = arith.constant 0 : index
    %c0_31 = arith.constant 0 : index
    %45 = vector.load %arg7[%c0_30, %c0_31] : memref<256x256xf32, #tpu.memory_space<vmem>>, vector<256x256xf32>
    %cst_32 = arith.constant dense<0.000000e+00> : vector<4x256xf32>
    %46 = tpu.matmul %44, %45, %cst_32 {dimension_numbers = #tpu.dot_dimension_numbers<[1], [0], [0], [1], [0, 0, 1, 1], [], []>} : vector<4x256xf32>, vector<256x256xf32>, vector<4x256xf32> -> vector<4x256xf32>
    %cst_33 = arith.constant 9.99999997E-7 : f32
    %47 = vector.broadcast %cst_33 : f32 to vector<4x256xf32>
    %48 = arith.addf %46, %47 : vector<4x256xf32>
    %49 = math.rsqrt %48 : vector<4x256xf32>
    %50 = arith.mulf %43, %49 : vector<4x256xf32>
    %51 = vector.broadcast %6 : vector<1x256xf32> to vector<4x256xf32>
    %52 = arith.mulf %50, %51 : vector<4x256xf32>
    %53 = vector.broadcast %7 : vector<1x256xf32> to vector<4x256xf32>
    %54 = arith.addf %52, %53 : vector<4x256xf32>
    %c0_34 = arith.constant 0 : index
    %c0_35 = arith.constant 0 : index
    %55 = vector.load %arg5[%c0_34, %c0_35] : memref<256x128xf32, #tpu.memory_space<vmem>>, vector<256x128xf32>
    %cst_36 = arith.constant dense<0.000000e+00> : vector<4x128xf32>
    %56 = tpu.matmul %54, %55, %cst_36 {dimension_numbers = #tpu.dot_dimension_numbers<[1], [0], [0], [1], [0, 0, 1, 1], [], []>} : vector<4x256xf32>, vector<256x128xf32>, vector<4x128xf32> -> vector<4x128xf32>
    %57 = vector.broadcast %5 : vector<1x128xf32> to vector<4x128xf32>
    %58 = arith.addf %56, %57 : vector<4x128xf32>
    %59 = arith.addf %12, %58 : vector<4x128xf32>
    %c0_37 = arith.constant 0 : index
    %c0_38 = arith.constant 0 : index
    %60 = vector.load %arg11[%c0_37, %c0_38] : memref<4x128xf32, #tpu.memory_space<vmem>>, vector<4x128xf32>
    tpu.vector_store %arg11[%c0_37, %c0_38], %59 {strides = array<i32>} : memref<4x128xf32, #tpu.memory_space<vmem>>, vector<4x128xf32>,
    return
  }
  func.func @transform_0(%arg0: i32) -> (i32, i32) {
    %c0_i32 = arith.constant 0 : i32
    %c0_i32_0 = arith.constant 0 : i32
    return %arg0, %c0_i32 : i32, i32
  }
  func.func @transform_1(%arg0: i32) -> (i32, i32) {
    %c0_i32 = arith.constant 0 : i32
    %c0_i32_0 = arith.constant 0 : i32
    return %arg0, %c0_i32 : i32, i32
  }
  func.func @transform_2(%arg0: i32) -> (i32, i32) {
    %c0_i32 = arith.constant 0 : i32
    %c0_i32_0 = arith.constant 0 : i32
    %c0_i32_1 = arith.constant 0 : i32
    return %c0_i32, %c0_i32_0 : i32, i32
  }
  func.func @transform_3(%arg0: i32) -> (i32, i32) {
    %c0_i32 = arith.constant 0 : i32
    %c0_i32_0 = arith.constant 0 : i32
    %c0_i32_1 = arith.constant 0 : i32
    return %c0_i32, %c0_i32_0 : i32, i32
  }
  func.func @transform_4(%arg0: i32) -> (i32, i32) {
    %c0_i32 = arith.constant 0 : i32
    %c0_i32_0 = arith.constant 0 : i32
    %c0_i32_1 = arith.constant 0 : i32
    return %c0_i32, %c0_i32_0 : i32, i32
  }
  func.func @transform_5(%arg0: i32) -> (i32, i32) {
    %c0_i32 = arith.constant 0 : i32
    %c0_i32_0 = arith.constant 0 : i32
    %c0_i32_1 = arith.constant 0 : i32
    return %c0_i32, %c0_i32_0 : i32, i32
  }
  func.func @transform_6(%arg0: i32) -> (i32, i32) {
    %c0_i32 = arith.constant 0 : i32
    %c0_i32_0 = arith.constant 0 : i32
    %c0_i32_1 = arith.constant 0 : i32
    return %c0_i32, %c0_i32_0 : i32, i32
  }
  func.func @transform_7(%arg0: i32) -> (i32, i32) {
    %c0_i32 = arith.constant 0 : i32
    %c0_i32_0 = arith.constant 0 : i32
    %c0_i32_1 = arith.constant 0 : i32
    return %c0_i32, %c0_i32_0 : i32, i32
  }
  func.func @transform_8(%arg0: i32) -> (i32, i32) {
    %c0_i32 = arith.constant 0 : i32
    %c0_i32_0 = arith.constant 0 : i32
    %c0_i32_1 = arith.constant 0 : i32
    return %c0_i32, %c0_i32_0 : i32, i32
  }
  func.func @transform_9(%arg0: i32) -> (i32, i32) {
    %c0_i32 = arith.constant 0 : i32
    %c0_i32_0 = arith.constant 0 : i32
    %c0_i32_1 = arith.constant 0 : i32
    return %c0_i32, %c0_i32_0 : i32, i32
  }
  func.func @transform_10(%arg0: i32) -> (i32, i32) {
    %c0_i32 = arith.constant 0 : i32
    %c0_i32_0 = arith.constant 0 : i32
    return %arg0, %c0_i32 : i32, i32
  }
}

</mosaic_0001>

<bundles_post_ra>
// kernel: tpu_custom_call.1
= control target key start
LH: loop header
LB: loop body
LE: loop exit
PB: predicated region body
PF: predicated region fallthrough
CT: control target
= control target key end

     0   :  { %15 = vsyncpa [#allocation3], 0  ;;  %s1641_s0 = inlined_call_operand.hbm [shape: f32[4,128], index: 0, kind: input, shape index: {}]   ;;  %s1642_s1 = inlined_call_operand.hbm [shape: f32[4,128], index: 1, kind: input, shape index: {}]   ;;  %s1643_s2 = inlined_call_operand.hbm [shape: f32[128,128], index: 2, kind: input, shape index: {}]   ;;  %s1644_s3 = inlined_call_operand.hbm [shape: f32[128,512], index: 3, kind: input, shape index: {}]   ;;  %s1645_s4 = inlined_call_operand.hbm [shape: f32[256,128], index: 4, kind: input, shape index: {}]   ;;  %s1646_s5 = inlined_call_operand.hbm [shape: f32[128,128], index: 5, kind: input, shape index: {}]   ;;  %s1647_s6 = inlined_call_operand.hbm [shape: f32[256,256], index: 6, kind: input, shape index: {}]   ;;  %s1648_s7 = inlined_call_operand.vmem [shape: f32[4,128], index: 7, kind: input, shape index: {}]   ;;  %s1649_s8 = inlined_call_operand.vmem [shape: f32[2,256], index: 8, kind: input, shape index: {}]   ;;  %s1650_s9 = inlined_call_operand.vmem [shape: f32[1,512], index: 9, kind: input, shape index: {}]   ;;  %s1651_s10 = inlined_call_operand.hbm [shape: f32[4,128], index: 10, kind: output, shape index: {}]  }
   0x1   :  { %16 = vsyncpa [#allocation6], 0 }
   0x2   :  { %17 = vsyncpa [#allocation9], 0 }
   0x3   :  { %18 = vsyncpa [#allocation12], 0 }
   0x4   :  { %19 = vsyncpa [#allocation4], 0  ;;  %s1406_s13 = smov [#allocation5]   ;;  %s1407_s15 = smov [#allocation8]  }
   0x5   :  { %s36_s14 = sshll.u32 %s1406_s13, 4  ;;  %s57_s16 = sshll.u32 %s1407_s15, 4  ;;  %s37_s14 = int_to_ptr.vmem [resolvable:$true] %s36_s14  ;;  %s58_s16 = int_to_ptr.vmem [resolvable:$true] %s57_s16 }
   0x6   :  { %s1244_s17 = scalar_lea.vmem %s37_s14, 64  ;;  %p1249_p1 = scmp.lt.s32.totalorder %s37_s14, %s37_s14 }
   0x7   :  { %p1245_p0 = scmp.ne.s32.totalorder %s37_s14, %s1244_s17  ;;  %p1250_p2 = scmp.lt.s32.totalorder %s1244_s17, %s1244_s17 }
   0x9   :  { %p1251_p3 = por %p1250_p2, %p1249_p1 }
   0xb   :  { %p1252_p4 = pnand %p1251_p3, %p1245_p0 }
   0xd   :  { %1255 = shalt.err (!%p1252_p4)
}
   0xe   :  { %39 = dma.hbm_to_vmem [thread:$0]  %s1642_s1, 64, %s37_s14, [#allocation6]  }
   0xf   :  { %s1264_s20 = scalar_lea.vmem %s58_s16, 8192  ;;  %p1269_p6 = scmp.lt.s32.totalorder %s58_s16, %s58_s16 }
  0x10   :  { %p1265_p5 = scmp.ne.s32.totalorder %s58_s16, %s1264_s20  ;;  %p1270_p7 = scmp.lt.s32.totalorder %s1264_s20, %s1264_s20 }
  0x12   :  { %p1271_p8 = por %p1270_p7, %p1269_p6 }
  0x14   :  { %p1272_p9 = pnand %p1271_p8, %p1265_p5 }
  0x16   :  { %1275 = shalt.err (!%p1272_p9)
}
  0x17   :  { %s1408_s21 = smov 512   ;;  %s1409_s22 = smov 32  }
  0x18   :  { %63 = dma.hbm_to_vmem [thread:$0]  %s1644_s3, 8192, %s58_s16, [#allocation9], %s1408_s21, %s1408_s21, %s1409_s22  }
  0x19   :  { %s1410_s25 = smov [#allocation11]   ;;  %s1411_s27 = smov [#allocation2]  }
  0x1a   :  { %s81_s26 = sshll.u32 %s1410_s25, 4  ;;  %s26_s28 = sshll.u32 %s1411_s27, 4  ;;  %s82_s26 = int_to_ptr.vmem [resolvable:$true] %s81_s26  ;;  %s27_s28 = int_to_ptr.vmem [resolvable:$true] %s26_s28 }
  0x1b   :  { %s1284_s1 = scalar_lea.vmem %s82_s26, 2048  ;;  %p1289_p11 = scmp.lt.s32.totalorder %s82_s26, %s82_s26 }
  0x1c   :  { %p1285_p10 = scmp.ne.s32.totalorder %s82_s26, %s1284_s1  ;;  %p1290_p12 = scmp.lt.s32.totalorder %s1284_s1, %s1284_s1 }
  0x1e   :  { %p1291_p13 = por %p1290_p12, %p1289_p11 }
  0x20   :  { %p1292_p0 = pnand %p1291_p13, %p1285_p10 }
  0x22   :  { %1295 = shalt.err (!%p1292_p0)
}
  0x23   :  { %s1412_s29 = smov 128   ;;  %s1413_s30 = smov 8  }
  0x24   :  { %87 = dma.hbm_to_vmem [thread:$0]  %s1646_s5, 2048, %s82_s26, [#allocation12], %s1412_s29, %s1412_s29, %s1413_s30  }
  0x25   :  { %s1304_s12 = scalar_lea.vmem %s27_s28, 64  ;;  %p1309_p2 = scmp.lt.s32.totalorder %s27_s28, %s27_s28 }
  0x26   :  { %p1305_p1 = scmp.ne.s32.totalorder %s27_s28, %s1304_s12  ;;  %p1310_p3 = scmp.lt.s32.totalorder %s1304_s12, %s1304_s12 }
  0x28   :  { %p1311_p4 = por %p1310_p3, %p1309_p2 }
  0x2a   :  { %p1312_p5 = pnand %p1311_p4, %p1305_p1 }
  0x2c   :  { %1315 = shalt.err (!%p1312_p5)
}
  0x2d   :  { %29 = dma.hbm_to_vmem [thread:$0]  %s1641_s0, 64, %s27_s28, [#allocation3]  }
  0x2e   :  { %s1414_s15 = smov [#allocation7]   ;;  %s1415_s17 = smov [#allocation10]  }
  0x2f   :  { %s45_s16 = sshll.u32 %s1414_s15, 4  ;;  %s69_s18 = sshll.u32 %s1415_s17, 4  ;;  %s46_s16 = int_to_ptr.vmem [resolvable:$true] %s45_s16  ;;  %s70_s18 = int_to_ptr.vmem [resolvable:$true] %s69_s18 }
  0x30   :  { %s1324_s19 = scalar_lea.vmem %s46_s16, 2048  ;;  %p1329_p7 = scmp.lt.s32.totalorder %s46_s16, %s46_s16 }
  0x31   :  { %p1325_p6 = scmp.ne.s32.totalorder %s46_s16, %s1324_s19  ;;  %p1330_p8 = scmp.lt.s32.totalorder %s1324_s19, %s1324_s19 }
  0x33   :  { %p1331_p9 = por %p1330_p8, %p1329_p7 }
  0x35   :  { %p1332_p10 = pnand %p1331_p9, %p1325_p6 }
  0x37   :  { %1335 = shalt.err (!%p1332_p10)
}
  0x38   :  { %51 = dma.hbm_to_vmem [thread:$0]  %s1643_s2, 2048, %s46_s16, [#allocation6], %s1412_s29, %s1412_s29, %s1413_s30  }
  0x39   :  { %s1344_s0 = scalar_lea.vmem %s70_s18, 4096  ;;  %p1349_p12 = scmp.lt.s32.totalorder %s70_s18, %s70_s18 }
  0x3a   :  { %p1345_p11 = scmp.ne.s32.totalorder %s70_s18, %s1344_s0  ;;  %p1350_p13 = scmp.lt.s32.totalorder %s1344_s0, %s1344_s0 }
  0x3c   :  { %p1351_p0 = por %p1350_p13, %p1349_p12 }
  0x3e   :  { %p1352_p1 = pnand %p1351_p0, %p1345_p11 }
  0x40   :  { %1355 = shalt.err (!%p1352_p1)
}
  0x41   :  { %75 = dma.hbm_to_vmem [thread:$0]  %s1645_s4, 4096, %s70_s18, [#allocation9], %s1412_s29, %s1412_s29, %s1413_s30  }
  0x42   :  { %s1416_s23 = smov [#allocation13]  }
  0x43   :  { %s93_s24 = sshll.u32 %s1416_s23, 4  ;;  %s94_s24 = int_to_ptr.vmem [resolvable:$true] %s93_s24 }
  0x44   :  { %s1364_s25 = scalar_lea.vmem %s94_s24, 8192  ;;  %p1369_p3 = scmp.lt.s32.totalorder %s94_s24, %s94_s24 }
  0x45   :  { %p1365_p2 = scmp.ne.s32.totalorder %s94_s24, %s1364_s25  ;;  %p1370_p4 = scmp.lt.s32.totalorder %s1364_s25, %s1364_s25 }
  0x47   :  { %p1371_p5 = por %p1370_p4, %p1369_p3 }
  0x49   :  { %p1372_p6 = pnand %p1371_p5, %p1365_p2 }
  0x4b   :  { %1375 = shalt.err (!%p1372_p6)
}
  0x4c   :  { %s1417_s2 = smov 256   ;;  %s1418_s26 = smov 16  }
  0x4d   :  { %99 = dma.hbm_to_vmem [thread:$0]  %s1647_s6, 8192, %s94_s24, [#allocation12], %s1417_s2, %s1417_s2, %s1418_s26  }
  0x4e   :  { %1396 = dma.done.wait [#allocation3], 64  }
  0x4f   :  { %1397 = vsyncadd [#allocation3], 4294967232 }
  0x50   :  { %1398 = dma.done.wait [#allocation6], 2112  }
  0x51   :  { %1399 = vsyncadd [#allocation6], 4294965184 }
  0x52   :  { %1400 = dma.done.wait [#allocation9], 12288  }
  0x53   :  { %1401 = vsyncadd [#allocation9], 4294955008 }
  0x54   :  { %1402 = dma.done.wait [#allocation12], 10240  }
  0x55   :  { %1403 = vsyncadd [#allocation12], 4294957056  ;;  %v1419_v0 = vmov 0.0   ;;  %vm1420_vm0 = vmmov 0   ;;  %v151_v1 = vld [vmem:[#allocation7 + $0x78] sm:$0xff]  ;;  %v150_v2 = vld [vmem:[#allocation7 + $0x70] sm:$0xff] }
  0x56   :  { %1101 = vmatprep.subr.mxu0 %v1419_v0  ;;  %1133 = vmatprep.mubr.msk.f32.mxu0 %vm1420_vm0, %v1419_v0  ;;  %v149_v3 = vld [vmem:[#allocation7 + $0x68] sm:$0xff]  ;;  %v148_v4 = vld [vmem:[#allocation7 + $0x60] sm:$0xff]  ;;  %v1515_v5 = vld [vmem:[#allocation11 + $0x78] sm:$0xff]  ;;  %s1421_s17 = smov [#allocation14]  }
  0x57   :  { %1136 = vmatprep.subr.mxu1 %v1419_v0  ;;  %1168 = vmatprep.mubr.msk.f32.mxu1 %vm1420_vm0, %v1419_v0  ;;  %v147_v6 = vld [vmem:[#allocation7 + $0x58] sm:$0xff]  ;;  %v1519_v7 = vld [vmem:[#allocation11 + $0x70] sm:$0xff]  ;;  %v1522_v8 = vld [vmem:[#allocation11 + $0x68] sm:$0xff]  ;;  %s996_s18 = sshll.u32 %s1421_s17, 4  ;;  %s997_s18 = int_to_ptr.vmem [resolvable:$true] %s996_s18 }
  0x58   :  { %1102 = vmatpush3.msra.mxu0 %v151_v1  ;;  %1137 = vmatpush3.msra.mxu1 %v1515_v5  ;;  %v146_v9 = vld [vmem:[#allocation7 + $0x50] sm:$0xff]  ;;  %v1527_v10 = vld [vmem:[#allocation11 + $0x60] sm:$0xff]  ;;  %v145_v11 = vld [vmem:[#allocation7 + $0x48] sm:$0xff]  ;;  %s1376_s19 = scalar_lea.vmem %s997_s18, 64  ;;  %p1381_p8 = scmp.lt.s32.totalorder %s997_s18, %s997_s18 }
  0x59   :  { %1103 = vmatprep.subr.mxu0 %v1419_v0  ;;  %1138 = vmatprep.subr.mxu1 %v1419_v0  ;;  %v1532_v12 = vld [vmem:[#allocation11 + $0x58] sm:$0xff]  ;;  %v144_v13 = vld [vmem:[#allocation7 + $0x40] sm:$0xff]  ;;  %v1537_v14 = vld [vmem:[#allocation11 + $0x50] sm:$0xff]  ;;  %p1377_p7 = scmp.ne.s32.totalorder %s997_s18, %s1376_s19  ;;  %p1382_p9 = scmp.lt.s32.totalorder %s1376_s19, %s1376_s19 }
  0x5a   :  { %1104 = vmatpush3.msra.mxu0 %v150_v2  ;;  %1139 = vmatpush3.msra.mxu1 %v1519_v7  ;;  %v143_v15 = vld [vmem:[#allocation7 + $0x38] sm:$0xff]  ;;  %v237_v16 = vld [vmem:[#allocation11 + $0x48] sm:$0xff]  ;;  %v142_v17 = vld [vmem:[#allocation7 + $0x30] sm:$0xff] }
  0x5b   :  { %1105 = vmatprep.subr.mxu0 %v1419_v0  ;;  %1140 = vmatprep.subr.mxu1 %v1419_v0  ;;  %v236_v18 = vld [vmem:[#allocation11 + $0x40] sm:$0xff]  ;;  %v141_v19 = vld [vmem:[#allocation7 + $0x28] sm:$0xff]  ;;  %v235_v20 = vld [vmem:[#allocation11 + $0x38] sm:$0xff]  ;;  %p1383_p10 = por %p1382_p9, %p1381_p8 }
  0x5c   :  { %1106 = vmatpush3.msra.mxu0 %v149_v3  ;;  %1141 = vmatpush3.msra.mxu1 %v1522_v8  ;;  %v140_v21 = vld [vmem:[#allocation7 + $0x20] sm:$0xff]  ;;  %v234_v22 = vld [vmem:[#allocation11 + $0x30] sm:$0xff]  ;;  %v139_v23 = vld [vmem:[#allocation7 + $0x18] sm:$0xff] }
  0x5d   :  { %1107 = vmatprep.subr.mxu0 %v1419_v0  ;;  %1142 = vmatprep.subr.mxu1 %v1419_v0  ;;  %v233_v24 = vld [vmem:[#allocation11 + $0x28] sm:$0xff]  ;;  %v138_v25 = vld [vmem:[#allocation7 + $0x10] sm:$0xff]  ;;  %v232_v26 = vld [vmem:[#allocation11 + $0x20] sm:$0xff]  ;;  %p1384_p11 = pnand %p1383_p10, %p1377_p7 }
  0x5e   :  { %1108 = vmatpush3.msra.mxu0 %v148_v4  ;;  %1143 = vmatpush3.msra.mxu1 %v1527_v10  ;;  %v137_v27 = vld [vmem:[#allocation7 + $0x8] sm:$0xff]  ;;  %v231_v28 = vld [vmem:[#allocation11 + $0x18] sm:$0xff]  ;;  %v136_v29 = vld [vmem:[#allocation7] sm:$0xff] }
  0x5f   :  { %1109 = vmatprep.subr.mxu0 %v1419_v0  ;;  %1144 = vmatprep.subr.mxu1 %v1419_v0  ;;  %v127_v30 = vld [vmem:[#allocation2] sm:$0xf]  ;;  %v230_v31 = vld [vmem:[#allocation11 + $0x10] sm:$0xff]  ;;  %v229_v32 = vld [vmem:[#allocation11 + $0x8] sm:$0xff] }
  0x60   :  { %1110 = vmatpush3.msra.mxu0 %v147_v6  ;;  %1145 = vmatpush3.msra.mxu1 %v1532_v12  ;;  %v228_v33 = vld [vmem:[#allocation11] sm:$0xff]  ;;  %v128_v34 = vld [vmem:[#allocation5] sm:$0xf]  ;;  %v1009_v35 = vld [vmem:[%s1648_s7] ss:$0 sm:$0xff] }
  0x61   :  { %1111 = vmatprep.subr.mxu0 %v1419_v0  ;;  %1146 = vmatprep.subr.mxu1 %v1419_v0  ;;  %v459_v40 = vld [vmem:[#allocation8 + $0x1e8] sm:$0xff]  ;;  %v461_v41 = vld [vmem:[#allocation8 + $0x1f8] sm:$0xff]  ;;  %v458_v42 = vld [vmem:[#allocation8 + $0x1e0] sm:$0xff] }
  0x62   :  { %1112 = vmatpush3.msra.mxu0 %v146_v9  ;;  %1147 = vmatpush3.msra.mxu1 %v1537_v14  ;;  %v455_v43 = vld [vmem:[#allocation8 + $0x1c8] sm:$0xff]  ;;  %v454_v44 = vld [vmem:[#allocation8 + $0x1c0] sm:$0xff]  ;;  %v460_v54 = vld [vmem:[#allocation8 + $0x1f0] sm:$0xff] }
  0x63   :  { %1113 = vmatprep.subr.mxu0 %v1419_v0  ;;  %1148 = vmatprep.subr.mxu1 %v1419_v0  ;;  %v451_v45 = vld [vmem:[#allocation8 + $0x1a8] sm:$0xff]  ;;  %v450_v46 = vld [vmem:[#allocation8 + $0x1a0] sm:$0xff]  ;;  %v457_v55 = vld [vmem:[#allocation8 + $0x1d8] sm:$0xff] }
  0x64   :  { %1114 = vmatpush3.msra.mxu0 %v145_v11  ;;  %1149 = vmatpush3.msra.mxu1 %v237_v16  ;;  %v447_v47 = vld [vmem:[#allocation8 + $0x188] sm:$0xff]  ;;  %v446_v48 = vld [vmem:[#allocation8 + $0x180] sm:$0xff]  ;;  %v456_v56 = vld [vmem:[#allocation8 + $0x1d0] sm:$0xff] }
  0x65   :  { %1115 = vmatprep.subr.mxu0 %v1419_v0  ;;  %1150 = vmatprep.subr.mxu1 %v1419_v0  ;;  %v443_v49 = vld [vmem:[#allocation8 + $0x168] sm:$0xff]  ;;  %v453_v57 = vld [vmem:[#allocation8 + $0x1b8] sm:$0xff]  ;;  %v452_v58 = vld [vmem:[#allocation8 + $0x1b0] sm:$0xff] }
  0x66   :  { %1116 = vmatpush3.msra.mxu0 %v144_v13  ;;  %1151 = vmatpush3.msra.mxu1 %v236_v18  ;;  %v449_v59 = vld [vmem:[#allocation8 + $0x198] sm:$0xff]  ;;  %v448_v60 = vld [vmem:[#allocation8 + $0x190] sm:$0xff]  ;;  %v442_v62 = vld [vmem:[#allocation8 + $0x160] sm:$0xff] }
  0x67   :  { %1117 = vmatprep.subr.mxu0 %v1419_v0  ;;  %1152 = vmatprep.subr.mxu1 %v1419_v0  ;;  %v445_v61 = vld [vmem:[#allocation8 + $0x178] sm:$0xff]  ;;  %v444_v63 = vld [vmem:[#allocation8 + $0x170] sm:$0xff]  ;;  %v439_v1 = vld [vmem:[#allocation8 + $0x148] sm:$0xff] }
  0x68   :  { %1118 = vmatpush3.msra.mxu0 %v143_v15  ;;  %1153 = vmatpush3.msra.mxu1 %v235_v20  ;;  %v441_v2 = vld [vmem:[#allocation8 + $0x158] sm:$0xff]  ;;  %v440_v3 = vld [vmem:[#allocation8 + $0x150] sm:$0xff]  ;;  %v435_v4 = vld [vmem:[#allocation8 + $0x128] sm:$0xff] }
  0x69   :  { %1119 = vmatprep.subr.mxu0 %v1419_v0  ;;  %1154 = vmatprep.subr.mxu1 %v1419_v0  ;;  %v434_v6 = vld [vmem:[#allocation8 + $0x120] sm:$0xff]  ;;  %v433_v9 = vld [vmem:[#allocation8 + $0x118] sm:$0xff]  ;;  %v432_v11 = vld [vmem:[#allocation8 + $0x110] sm:$0xff] }
  0x6a   :  { %1120 = vmatpush3.msra.mxu0 %v142_v17  ;;  %1155 = vmatpush3.msra.mxu1 %v234_v22  ;;  %v429_v13 = vld [vmem:[#allocation8 + $0xf8] sm:$0xff]  ;;  %v428_v15 = vld [vmem:[#allocation8 + $0xf0] sm:$0xff] }
  0x6b   :  { %1121 = vmatprep.subr.mxu0 %v1419_v0  ;;  %1156 = vmatprep.subr.mxu1 %v1419_v0  ;;  %v425_v17 = vld [vmem:[#allocation8 + $0xd8] sm:$0xff] }
  0x6c   :  { %1122 = vmatpush3.msra.mxu0 %v141_v19  ;;  %1157 = vmatpush3.msra.mxu1 %v233_v24  ;;  %v424_v19 = vld [vmem:[#allocation8 + $0xd0] sm:$0xff] }
  0x6d   :  { %1123 = vmatprep.subr.mxu0 %v1419_v0  ;;  %1158 = vmatprep.subr.mxu1 %v1419_v0 }
  0x6e   :  { %1124 = vmatpush3.msra.mxu0 %v140_v21  ;;  %1159 = vmatpush3.msra.mxu1 %v232_v26  ;;  %v421_v21 = vld [vmem:[#allocation8 + $0xb8] sm:$0xff] }
  0x6f   :  { %1125 = vmatprep.subr.mxu0 %v1419_v0  ;;  %1160 = vmatprep.subr.mxu1 %v1419_v0 }
  0x70   :  { %1126 = vmatpush3.msra.mxu0 %v139_v23  ;;  %1161 = vmatpush3.msra.mxu1 %v231_v28  ;;  %v420_v23 = vld [vmem:[#allocation8 + $0xb0] sm:$0xff] }
  0x71   :  { %1127 = vmatprep.subr.mxu0 %v1419_v0  ;;  %1162 = vmatprep.subr.mxu1 %v1419_v0 }
  0x72   :  { %1128 = vmatpush3.msra.mxu0 %v138_v25  ;;  %1163 = vmatpush3.msra.mxu1 %v230_v31  ;;  %v417_v25 = vld [vmem:[#allocation8 + $0x98] sm:$0xff] }
  0x73   :  { %1129 = vmatprep.subr.mxu0 %v1419_v0  ;;  %1164 = vmatprep.subr.mxu1 %v1419_v0 }
  0x74   :  { %1130 = vmatpush3.msra.mxu0 %v137_v27  ;;  %1165 = vmatpush3.msra.mxu1 %v229_v32  ;;  %v416_v27 = vld [vmem:[#allocation8 + $0x90] sm:$0xff] }
  0x75   :  { %1131 = vmatprep.subr.mxu0 %v1419_v0  ;;  %1166 = vmatprep.subr.mxu1 %v1419_v0 }
  0x76   :  { %1132 = vmatpush3.msra.mxu0 %v136_v29  ;;  %1167 = vmatpush3.msra.mxu1 %v228_v33  ;;  %v413_v29 = vld [vmem:[#allocation8 + $0x78] sm:$0xff] }
  0x77   :  { %1134 = vmatmul.mubr.f32.vlgmr.msra.gmra.mxu0 %v127_v30  ;;  %1171 = vmatprep.subr.mxu0 %v1419_v0  ;;  %v410_v30 = vld [vmem:[#allocation8 + $0x60] sm:$0xff] }
  0x78   :  { %1172 = vmatpush3.msra.mxu0 %v1515_v5  ;;  %1203 = vmatprep.mubr.msk.f32.mxu0 %vm1420_vm0, %v1419_v0  ;;  %v437_v5 = vld [vmem:[#allocation8 + $0x138] sm:$0xff] }
  0x79   :  { %1173 = vmatprep.subr.mxu0 %v1419_v0  ;;  %484 = vmatprep.subr.mxu1 %v459_v40  ;;  %v404_v40 = vld [vmem:[#allocation8 + $0x30] sm:$0xff] }
  0x7a   :  { %1174 = vmatpush3.msra.mxu0 %v1519_v7  ;;  %v436_v7 = vld [vmem:[#allocation8 + $0x130] sm:$0xff] }
  0x7b   :  { %1175 = vmatprep.subr.mxu0 %v1419_v0 }
  0x7c   :  { %1176 = vmatpush3.msra.mxu0 %v1522_v8  ;;  %v431_v8 = vld [vmem:[#allocation8 + $0x108] sm:$0xff] }
  0x7d   :  { %1177 = vmatprep.subr.mxu0 %v1419_v0 }
  0x7e   :  { %1178 = vmatpush3.msra.mxu0 %v1527_v10  ;;  %v430_v10 = vld [vmem:[#allocation8 + $0x100] sm:$0xff] }
  0x7f   :  { %1179 = vmatprep.subr.mxu0 %v1419_v0 }
  0x80   :  { %1180 = vmatpush3.msra.mxu0 %v1532_v12  ;;  %v427_v12 = vld [vmem:[#allocation8 + $0xe8] sm:$0xff] }
  0x81   :  { %1181 = vmatprep.subr.mxu0 %v1419_v0 }
  0x82   :  { %1182 = vmatpush3.msra.mxu0 %v1537_v14  ;;  %v426_v14 = vld [vmem:[#allocation8 + $0xe0] sm:$0xff] }
  0x83   :  { %1183 = vmatprep.subr.mxu0 %v1419_v0 }
  0x84   :  { %1184 = vmatpush3.msra.mxu0 %v237_v16  ;;  %v423_v16 = vld [vmem:[#allocation8 + $0xc8] sm:$0xff] }
  0x85   :  { %1185 = vmatprep.subr.mxu0 %v1419_v0 }
  0x86   :  { %1186 = vmatpush3.msra.mxu0 %v236_v18  ;;  %v422_v18 = vld [vmem:[#allocation8 + $0xc0] sm:$0xff] }
  0x87   :  { %1187 = vmatprep.subr.mxu0 %v1419_v0 }
  0x88   :  { %1188 = vmatpush3.msra.mxu0 %v235_v20  ;;  %v419_v20 = vld [vmem:[#allocation8 + $0xa8] sm:$0xff] }
  0x89   :  { %1189 = vmatprep.subr.mxu0 %v1419_v0 }
  0x8a   :  { %1190 = vmatpush3.msra.mxu0 %v234_v22  ;;  %v418_v22 = vld [vmem:[#allocation8 + $0xa0] sm:$0xff] }
  0x8b   :  { %1191 = vmatprep.subr.mxu0 %v1419_v0 }
  0x8c   :  { %1192 = vmatpush3.msra.mxu0 %v233_v24  ;;  %v415_v24 = vld [vmem:[#allocation8 + $0x88] sm:$0xff] }
  0x8d   :  { %1193 = vmatprep.subr.mxu0 %v1419_v0 }
  0x8e   :  { %1194 = vmatpush3.msra.mxu0 %v232_v26  ;;  %v414_v26 = vld [vmem:[#allocation8 + $0x80] sm:$0xff] }
  0x8f   :  { %1195 = vmatprep.subr.mxu0 %v1419_v0 }
  0x90   :  { %1196 = vmatpush3.msra.mxu0 %v231_v28  ;;  %v411_v28 = vld [vmem:[#allocation8 + $0x68] sm:$0xff] }
  0x91   :  { %1197 = vmatprep.subr.mxu0 %v1419_v0 }
  0x92   :  { %1198 = vmatpush3.msra.mxu0 %v230_v31  ;;  %v412_v31 = vld [vmem:[#allocation8 + $0x70] sm:$0xff] }
  0x93   :  { %1199 = vmatprep.subr.mxu0 %v1419_v0 }
  0x94   :  { %1200 = vmatpush3.msra.mxu0 %v229_v32  ;;  %v407_v32 = vld [vmem:[#allocation8 + $0x48] sm:$0xff] }
  0x95   :  { %1201 = vmatprep.subr.mxu0 %v1419_v0 }
  0x96   :  { %1202 = vmatpush3.msra.mxu0 %v228_v33  ;;  %v409_v33 = vld [vmem:[#allocation8 + $0x58] sm:$0xff] }
  0x97   :  { %555 = vmatprep.subr.mxu0 %v461_v41  ;;  %v399_v41 = vld [vmem:[#allocation8 + $0x8] sm:$0xff] }
 0x137   :  { %v218_v36 = vpop.f32.mrf.mxu0 }
 0x138   :  { %v222_v37 = vadd.f32 %v218_v36, %v128_v34  ;;  %v406_v34 = vld [vmem:[#allocation8 + $0x40] sm:$0xff]  ;;  %v403_v36 = vld [vmem:[#allocation8 + $0x28] sm:$0xff] }
 0x139   :  { %v1135_v38 = vpop.f32.mrf.mxu0 }
 0x13a   :  { %v1588_v39 = vadd.f32 %v1009_v35, %v222_v37  ;;  %v408_v35 = vld [vmem:[#allocation8 + $0x50] sm:$0xff]  ;;  %v405_v37 = vld [vmem:[#allocation8 + $0x38] sm:$0xff]  ;;  %v402_v38 = vld [vmem:[#allocation8 + $0x20] sm:$0xff] }
 0x13c   :  { %1169 = vmatmul.mubr.f32.vlgmr.msra.gmra.mxu1 %v1588_v39 }
 0x13d   :  { %548 = vmatprep.mubr.f32.mxu1 %v1419_v0  ;;  %485 = vmatpush1.msra.mxu1 %v458_v42  ;;  %v401_v42 = vld [vmem:[#allocation8 + $0x18] sm:$0xff] }
 0x13e   :  { %486 = vmatprep.subr.mxu1 %v455_v43  ;;  %v398_v43 = vld [vmem:[#allocation8] sm:$0xff] }
 0x13f   :  { %487 = vmatpush1.msra.mxu1 %v454_v44  ;;  %v400_v44 = vld [vmem:[#allocation8 + $0x10] sm:$0xff] }
 0x140   :  { %488 = vmatprep.subr.mxu1 %v451_v45  ;;  %v673_v45 = vld [vmem:[#allocation13 + $0xf8] sm:$0xff] }
 0x141   :  { %489 = vmatpush1.msra.mxu1 %v450_v46 }
 0x142   :  { %490 = vmatprep.subr.mxu1 %v447_v47 }
 0x143   :  { %491 = vmatpush1.msra.mxu1 %v446_v48 }
 0x144   :  { %492 = vmatprep.subr.mxu1 %v443_v49 }
 0x145   :  { %493 = vmatpush1.msra.mxu1 %v442_v62  ;;  %v665_v62 = vld [vmem:[#allocation13 + $0xb8] sm:$0xff] }
 0x146   :  { %494 = vmatprep.subr.mxu1 %v439_v1  ;;  %v663_v1 = vld [vmem:[#allocation13 + $0xa8] sm:$0xff] }
 0x1fc   :  { %v310_v50 = vpop.f32.mrf.mxu1 }
 0x1fd   :  { %v1593_v51 = vsub.f32 %v1588_v39, %v310_v50  ;;  %v1010_v50 = vld [vmem:[%s1648_s7 + $0x1] ss:$0 sm:$0xff] }
 0x1fe   :  { %v1170_v52 = vpop.f32.mrf.mxu1 }
 0x1ff   :  { %v315_v53 = vmul.f32 %v1593_v51, %v1593_v51 }
 0x201   :  { %1204 = vmatmul.mubr.f32.vlgmr.msra.gmra.mxu0 %v315_v53  ;;  %v1011_v53 = vld [vmem:[%s1648_s7 + $0x2] ss:$0 sm:$0xff] }
 0x202   :  { %556 = vmatpush1.msra.mxu0 %v460_v54  ;;  %619 = vmatprep.mubr.f32.mxu0 %v1419_v0  ;;  %v438_v0 = vld [vmem:[#allocation8 + $0x140] sm:$0xff] }
 0x203   :  { %557 = vmatprep.subr.mxu0 %v457_v55  ;;  %495 = vmatpush1.msra.mxu1 %v438_v0  ;;  %v661_v0 = vld [vmem:[#allocation13 + $0x98] sm:$0xff] }
 0x204   :  { %558 = vmatpush1.msra.mxu0 %v456_v56  ;;  %496 = vmatprep.subr.mxu1 %v435_v4  ;;  %v672_v56 = vld [vmem:[#allocation13 + $0xf0] sm:$0xff]  ;;  %v659_v4 = vld [vmem:[#allocation13 + $0x88] sm:$0xff] }
 0x205   :  { %559 = vmatprep.subr.mxu0 %v453_v57  ;;  %497 = vmatpush1.msra.mxu1 %v434_v6  ;;  %v671_v57 = vld [vmem:[#allocation13 + $0xe8] sm:$0xff]  ;;  %v657_v6 = vld [vmem:[#allocation13 + $0x78] sm:$0xff] }
 0x206   :  { %560 = vmatpush1.msra.mxu0 %v452_v58  ;;  %498 = vmatprep.subr.mxu1 %v431_v8  ;;  %v670_v58 = vld [vmem:[#allocation13 + $0xe0] sm:$0xff]  ;;  %v655_v8 = vld [vmem:[#allocation13 + $0x68] sm:$0xff] }
 0x207   :  { %561 = vmatprep.subr.mxu0 %v449_v59  ;;  %499 = vmatpush1.msra.mxu1 %v430_v10  ;;  %v669_v59 = vld [vmem:[#allocation13 + $0xd8] sm:$0xff] }
 0x208   :  { %562 = vmatpush1.msra.mxu0 %v448_v60  ;;  %500 = vmatprep.subr.mxu1 %v427_v12  ;;  %v668_v60 = vld [vmem:[#allocation13 + $0xd0] sm:$0xff]  ;;  %v653_v10 = vld [vmem:[#allocation13 + $0x58] sm:$0xff]  ;;  %v651_v12 = vld [vmem:[#allocation13 + $0x48] sm:$0xff] }
 0x209   :  { %563 = vmatprep.subr.mxu0 %v445_v61  ;;  %501 = vmatpush1.msra.mxu1 %v426_v14  ;;  %v667_v61 = vld [vmem:[#allocation13 + $0xc8] sm:$0xff]  ;;  %v649_v14 = vld [vmem:[#allocation13 + $0x38] sm:$0xff] }
 0x20a   :  { %564 = vmatpush1.msra.mxu0 %v444_v63  ;;  %502 = vmatprep.subr.mxu1 %v423_v16  ;;  %v664_v63 = vld [vmem:[#allocation13 + $0xb0] sm:$0xff]  ;;  %v647_v16 = vld [vmem:[#allocation13 + $0x28] sm:$0xff] }
 0x20b   :  { %565 = vmatprep.subr.mxu0 %v441_v2  ;;  %503 = vmatpush1.msra.mxu1 %v422_v18  ;;  %v662_v2 = vld [vmem:[#allocation13 + $0xa0] sm:$0xff]  ;;  %v645_v18 = vld [vmem:[#allocation13 + $0x18] sm:$0xff] }
 0x20c   :  { %566 = vmatpush1.msra.mxu0 %v440_v3  ;;  %504 = vmatprep.subr.mxu1 %v419_v20  ;;  %v660_v3 = vld [vmem:[#allocation13 + $0x90] sm:$0xff]  ;;  %v643_v20 = vld [vmem:[#allocation13 + $0x8] sm:$0xff] }
 0x20d   :  { %567 = vmatprep.subr.mxu0 %v437_v5  ;;  %505 = vmatpush1.msra.mxu1 %v418_v22  ;;  %v658_v5 = vld [vmem:[#allocation13 + $0x80] sm:$0xff]  ;;  %v705_v22 = vld [vmem:[#allocation13 + $0x1f8] sm:$0xff] }
 0x20e   :  { %568 = vmatpush1.msra.mxu0 %v436_v7  ;;  %506 = vmatprep.subr.mxu1 %v415_v24  ;;  %v656_v7 = vld [vmem:[#allocation13 + $0x70] sm:$0xff]  ;;  %v703_v24 = vld [vmem:[#allocation13 + $0x1e8] sm:$0xff] }
 0x20f   :  { %569 = vmatprep.subr.mxu0 %v433_v9  ;;  %507 = vmatpush1.msra.mxu1 %v414_v26  ;;  %v654_v9 = vld [vmem:[#allocation13 + $0x60] sm:$0xff]  ;;  %v701_v26 = vld [vmem:[#allocation13 + $0x1d8] sm:$0xff] }
 0x210   :  { %570 = vmatpush1.msra.mxu0 %v432_v11  ;;  %508 = vmatprep.subr.mxu1 %v411_v28  ;;  %v652_v11 = vld [vmem:[#allocation13 + $0x50] sm:$0xff]  ;;  %v699_v28 = vld [vmem:[#allocation13 + $0x1c8] sm:$0xff] }
 0x211   :  { %571 = vmatprep.subr.mxu0 %v429_v13  ;;  %509 = vmatpush1.msra.mxu1 %v410_v30  ;;  %v650_v13 = vld [vmem:[#allocation13 + $0x40] sm:$0xff]  ;;  %v697_v30 = vld [vmem:[#allocation13 + $0x1b8] sm:$0xff] }
 0x212   :  { %572 = vmatpush1.msra.mxu0 %v428_v15  ;;  %510 = vmatprep.subr.mxu1 %v407_v32  ;;  %v648_v15 = vld [vmem:[#allocation13 + $0x30] sm:$0xff]  ;;  %v695_v32 = vld [vmem:[#allocation13 + $0x1a8] sm:$0xff] }
 0x213   :  { %573 = vmatprep.subr.mxu0 %v425_v17  ;;  %511 = vmatpush1.msra.mxu1 %v406_v34  ;;  %v646_v17 = vld [vmem:[#allocation13 + $0x20] sm:$0xff]  ;;  %v693_v34 = vld [vmem:[#allocation13 + $0x198] sm:$0xff] }
 0x214   :  { %574 = vmatpush1.msra.mxu0 %v424_v19  ;;  %512 = vmatprep.subr.mxu1 %v403_v36  ;;  %v644_v19 = vld [vmem:[#allocation13 + $0x10] sm:$0xff]  ;;  %v691_v36 = vld [vmem:[#allocation13 + $0x188] sm:$0xff] }
 0x215   :  { %575 = vmatprep.subr.mxu0 %v421_v21  ;;  %513 = vmatpush1.msra.mxu1 %v402_v38  ;;  %v642_v21 = vld [vmem:[#allocation13] sm:$0xff]  ;;  %v689_v38 = vld [vmem:[#allocation13 + $0x178] sm:$0xff] }
 0x216   :  { %576 = vmatpush1.msra.mxu0 %v420_v23  ;;  %514 = vmatprep.subr.mxu1 %v399_v41  ;;  %v704_v23 = vld [vmem:[#allocation13 + $0x1f0] sm:$0xff]  ;;  %v687_v41 = vld [vmem:[#allocation13 + $0x168] sm:$0xff] }
 0x217   :  { %577 = vmatprep.subr.mxu0 %v417_v25  ;;  %515 = vmatpush1.msra.mxu1 %v398_v43  ;;  %v702_v25 = vld [vmem:[#allocation13 + $0x1e0] sm:$0xff]  ;;  %v685_v43 = vld [vmem:[#allocation13 + $0x158] sm:$0xff] }
 0x218   :  { %578 = vmatpush1.msra.mxu0 %v416_v27  ;;  %706 = vmatprep.subr.mxu1 %v673_v45  ;;  %v700_v27 = vld [vmem:[#allocation13 + $0x1d0] sm:$0xff] }
 0x219   :  { %579 = vmatprep.subr.mxu0 %v413_v29  ;;  %v698_v29 = vld [vmem:[#allocation13 + $0x1c0] sm:$0xff] }
 0x21a   :  { %580 = vmatpush1.msra.mxu0 %v412_v31  ;;  %v696_v31 = vld [vmem:[#allocation13 + $0x1b0] sm:$0xff] }
 0x21b   :  { %581 = vmatprep.subr.mxu0 %v409_v33  ;;  %v694_v33 = vld [vmem:[#allocation13 + $0x1a0] sm:$0xff] }
 0x21c   :  { %582 = vmatpush1.msra.mxu0 %v408_v35  ;;  %v692_v35 = vld [vmem:[#allocation13 + $0x190] sm:$0xff] }
 0x21d   :  { %583 = vmatprep.subr.mxu0 %v405_v37  ;;  %v690_v37 = vld [vmem:[#allocation13 + $0x180] sm:$0xff] }
 0x21e   :  { %584 = vmatpush1.msra.mxu0 %v404_v40  ;;  %v688_v40 = vld [vmem:[#allocation13 + $0x170] sm:$0xff] }
 0x21f   :  { %585 = vmatprep.subr.mxu0 %v401_v42  ;;  %v686_v42 = vld [vmem:[#allocation13 + $0x160] sm:$0xff] }
 0x220   :  { %586 = vmatpush1.msra.mxu0 %v400_v44  ;;  %v684_v44 = vld [vmem:[#allocation13 + $0x150] sm:$0xff] }
 0x221   :  { %781 = vmatprep.subr.mxu0 %v673_v45  ;;  %v683_v45 = vld [vmem:[#allocation13 + $0x148] sm:$0xff] }
 0x2c1   :  { %v382_v46 = vpop.f32.mrf.mxu0 }
 0x2c2   :  { %v383_v47 = vadd.f32 1e-05, %v382_v46  ;;  %v682_v46 = vld [vmem:[#allocation13 + $0x140] sm:$0xff] }
 0x2c3   :  { %v1205_v48 = vpop.f32.mrf.mxu0 }
 0x2c4   :  { %1222 = vrsqrt.f32 %v383_v47  ;;  %v681_v47 = vld [vmem:[#allocation13 + $0x138] sm:$0xff]  ;;  %v680_v48 = vld [vmem:[#allocation13 + $0x130] sm:$0xff] }
 0x2d1   :  { %v1223_v49 = vpop.eup %1222 }
 0x2d2   :  { %v387_v52 = vmul.f32 %v1223_v49, %v1593_v51  ;;  %v666_v51 = vld [vmem:[#allocation13 + $0xc0] sm:$0xff]  ;;  %v679_v49 = vld [vmem:[#allocation13 + $0x128] sm:$0xff] }
 0x2d4   :  { %v392_v54 = vmul.f32 %v1010_v50, %v387_v52  ;;  %v678_v50 = vld [vmem:[#allocation13 + $0x120] sm:$0xff]  ;;  %v677_v52 = vld [vmem:[#allocation13 + $0x118] sm:$0xff] }
 0x2d6   :  { %v397_v55 = vadd.f32 %v1011_v53, %v392_v54  ;;  %v676_v53 = vld [vmem:[#allocation13 + $0x110] sm:$0xff]  ;;  %v675_v54 = vld [vmem:[#allocation13 + $0x108] sm:$0xff] }
 0x2d8   :  { %549 = vmatmul.mubr.f32.vlgmr.msra.gmra.mxu1 %v397_v55  ;;  %620 = vmatmul.mubr.f32.vlgmr.msra.gmra.mxu0 %v397_v55  ;;  %v674_v55 = vld [vmem:[#allocation13 + $0x100] sm:$0xff] }
 0x2d9   :  { %707 = vmatpush1.msra.mxu1 %v672_v56  ;;  %782 = vmatpush1.msra.mxu0 %v672_v56  ;;  %v464_v56 = vlaneseq }
 0x2da   :  { %708 = vmatprep.subr.mxu1 %v671_v57  ;;  %783 = vmatprep.subr.mxu0 %v671_v57 }
 0x2db   :  { %709 = vmatpush1.msra.mxu1 %v670_v58  ;;  %784 = vmatpush1.msra.mxu0 %v670_v58  ;;  %v465_v57 = vshrl.u32 %v464_v56, 7  ;;  %v900_v56 = vld [vmem:[#allocation10 + $0x90] sm:$0xff] }
 0x2dc   :  { %710 = vmatprep.subr.mxu1 %v669_v59  ;;  %785 = vmatprep.subr.mxu0 %v669_v59  ;;  %v462_v59 = vld [vmem:[%s1650_s9] sm:$0xf] }
 0x2dd   :  { %711 = vmatpush1.msra.mxu1 %v668_v60  ;;  %786 = vmatpush1.msra.mxu0 %v668_v60  ;;  %v1605_v58 = vsub.s32 0, %v465_v57  ;;  %v1610_v60 = vsub.s32 1, %v465_v57 }
 0x2de   :  { %712 = vmatprep.subr.mxu1 %v667_v61  ;;  %787 = vmatprep.subr.mxu0 %v667_v61 }
 0x2df   :  { %713 = vmatpush1.msra.mxu1 %v666_v51  ;;  %788 = vmatpush1.msra.mxu0 %v666_v51  ;;  %v467_v61 = vrot.slane %v462_v59, %v1605_v58  ;;  %v471_v51 = vrot.slane %v462_v59, %v1610_v60 }
 0x2e0   :  { %714 = vmatprep.subr.mxu1 %v665_v62  ;;  %789 = vmatprep.subr.mxu0 %v665_v62 }
 0x2e1   :  { %715 = vmatpush1.msra.mxu1 %v664_v63  ;;  %790 = vmatpush1.msra.mxu0 %v664_v63 }
 0x2e2   :  { %716 = vmatprep.subr.mxu1 %v663_v1  ;;  %791 = vmatprep.subr.mxu0 %v663_v1 }
 0x2e3   :  { %717 = vmatpush1.msra.mxu1 %v662_v2  ;;  %792 = vmatpush1.msra.mxu0 %v662_v2 }
 0x2e4   :  { %718 = vmatprep.subr.mxu1 %v661_v0  ;;  %793 = vmatprep.subr.mxu0 %v661_v0 }
 0x2e5   :  { %719 = vmatpush1.msra.mxu1 %v660_v3  ;;  %794 = vmatpush1.msra.mxu0 %v660_v3 }
 0x2e6   :  { %720 = vmatprep.subr.mxu1 %v659_v4  ;;  %795 = vmatprep.subr.mxu0 %v659_v4 }
 0x2e7   :  { %721 = vmatpush1.msra.mxu1 %v658_v5  ;;  %796 = vmatpush1.msra.mxu0 %v658_v5 }
 0x2e8   :  { %722 = vmatprep.subr.mxu1 %v657_v6  ;;  %797 = vmatprep.subr.mxu0 %v657_v6 }
 0x2e9   :  { %723 = vmatpush1.msra.mxu1 %v656_v7  ;;  %798 = vmatpush1.msra.mxu0 %v656_v7 }
 0x2ea   :  { %724 = vmatprep.subr.mxu1 %v655_v8  ;;  %799 = vmatprep.subr.mxu0 %v655_v8  ;;  %v478_v8 = vsub.s32 3, %v465_v57 }
 0x2eb   :  { %725 = vmatpush1.msra.mxu1 %v654_v9  ;;  %800 = vmatpush1.msra.mxu0 %v654_v9  ;;  %v474_v9 = vsub.s32 2, %v465_v57  ;;  %v884_v57 = vld [vmem:[#allocation10 + $0x10] sm:$0xff] }
 0x2ec   :  { %726 = vmatprep.subr.mxu1 %v653_v10  ;;  %801 = vmatprep.subr.mxu0 %v653_v10 }
 0x2ed   :  { %727 = vmatpush1.msra.mxu1 %v652_v11  ;;  %802 = vmatpush1.msra.mxu0 %v652_v11  ;;  %v479_v11 = vrot.slane %v462_v59, %v478_v8 }
 0x2ee   :  { %728 = vmatprep.subr.mxu1 %v651_v12  ;;  %803 = vmatprep.subr.mxu0 %v651_v12 }
 0x2ef   :  { %729 = vmatpush1.msra.mxu1 %v650_v13  ;;  %804 = vmatpush1.msra.mxu0 %v650_v13  ;;  %v475_v13 = vrot.slane %v462_v59, %v474_v9  ;;  %v899_v59 = vld [vmem:[#allocation10 + $0x88] sm:$0xff] }
 0x2f0   :  { %730 = vmatprep.subr.mxu1 %v649_v14  ;;  %805 = vmatprep.subr.mxu0 %v649_v14 }
 0x2f1   :  { %731 = vmatpush1.msra.mxu1 %v648_v15  ;;  %806 = vmatpush1.msra.mxu0 %v648_v15 }
 0x2f2   :  { %732 = vmatprep.subr.mxu1 %v647_v16  ;;  %807 = vmatprep.subr.mxu0 %v647_v16 }
 0x2f3   :  { %733 = vmatpush1.msra.mxu1 %v646_v17  ;;  %808 = vmatpush1.msra.mxu0 %v646_v17 }
 0x2f4   :  { %734 = vmatprep.subr.mxu1 %v645_v18  ;;  %809 = vmatprep.subr.mxu0 %v645_v18 }
 0x2f5   :  { %735 = vmatpush1.msra.mxu1 %v644_v19  ;;  %810 = vmatpush1.msra.mxu0 %v644_v19 }
 0x2f6   :  { %736 = vmatprep.subr.mxu1 %v643_v20  ;;  %811 = vmatprep.subr.mxu0 %v643_v20 }
 0x2f7   :  { %737 = vmatpush1.msra.mxu1 %v642_v21  ;;  %812 = vmatpush1.msra.mxu0 %v642_v21 }
 0x2f8   :  { %738 = vmatprep.subr.mxu1 %v705_v22  ;;  %813 = vmatprep.subr.mxu0 %v705_v22  ;;  %v913_v22 = vld [vmem:[#allocation10 + $0xf8] sm:$0xff] }
 0x2f9   :  { %739 = vmatpush2.msra.mxu1 %v704_v23  ;;  %814 = vmatpush2.msra.mxu0 %v704_v23  ;;  %v897_v23 = vld [vmem:[#allocation10 + $0x78] sm:$0xff] }
 0x2fa   :  { %740 = vmatprep.subr.mxu1 %v703_v24  ;;  %815 = vmatprep.subr.mxu0 %v703_v24  ;;  %v912_v24 = vld [vmem:[#allocation10 + $0xf0] sm:$0xff] }
 0x2fb   :  { %741 = vmatpush2.msra.mxu1 %v702_v25  ;;  %816 = vmatpush2.msra.mxu0 %v702_v25  ;;  %v896_v25 = vld [vmem:[#allocation10 + $0x70] sm:$0xff] }
 0x2fc   :  { %742 = vmatprep.subr.mxu1 %v701_v26  ;;  %817 = vmatprep.subr.mxu0 %v701_v26  ;;  %v911_v26 = vld [vmem:[#allocation10 + $0xe8] sm:$0xff] }
 0x2fd   :  { %743 = vmatpush2.msra.mxu1 %v700_v27  ;;  %818 = vmatpush2.msra.mxu0 %v700_v27  ;;  %v895_v27 = vld [vmem:[#allocation10 + $0x68] sm:$0xff] }
 0x2fe   :  { %744 = vmatprep.subr.mxu1 %v699_v28  ;;  %819 = vmatprep.subr.mxu0 %v699_v28 }
 0x2ff   :  { %745 = vmatpush2.msra.mxu1 %v698_v29  ;;  %820 = vmatpush2.msra.mxu0 %v698_v29 }
 0x300   :  { %746 = vmatprep.subr.mxu1 %v697_v30  ;;  %821 = vmatprep.subr.mxu0 %v697_v30 }
 0x301   :  { %747 = vmatpush2.msra.mxu1 %v696_v31  ;;  %822 = vmatpush2.msra.mxu0 %v696_v31 }
 0x302   :  { %748 = vmatprep.subr.mxu1 %v695_v32  ;;  %823 = vmatprep.subr.mxu0 %v695_v32 }
 0x303   :  { %749 = vmatpush2.msra.mxu1 %v694_v33  ;;  %824 = vmatpush2.msra.mxu0 %v694_v33 }
 0x304   :  { %750 = vmatprep.subr.mxu1 %v693_v34  ;;  %825 = vmatprep.subr.mxu0 %v693_v34  ;;  %v910_v34 = vld [vmem:[#allocation10 + $0xe0] sm:$0xff] }
 0x305   :  { %751 = vmatpush2.msra.mxu1 %v692_v35  ;;  %826 = vmatpush2.msra.mxu0 %v692_v35  ;;  %v894_v35 = vld [vmem:[#allocation10 + $0x60] sm:$0xff] }
 0x306   :  { %752 = vmatprep.subr.mxu1 %v691_v36  ;;  %827 = vmatprep.subr.mxu0 %v691_v36  ;;  %v909_v36 = vld [vmem:[#allocation10 + $0xd8] sm:$0xff] }
 0x307   :  { %753 = vmatpush2.msra.mxu1 %v690_v37  ;;  %828 = vmatpush2.msra.mxu0 %v690_v37  ;;  %v893_v37 = vld [vmem:[#allocation10 + $0x58] sm:$0xff] }
 0x308   :  { %754 = vmatprep.subr.mxu1 %v689_v38  ;;  %829 = vmatprep.subr.mxu0 %v689_v38  ;;  %v908_v38 = vld [vmem:[#allocation10 + $0xd0] sm:$0xff] }
 0x309   :  { %755 = vmatpush2.msra.mxu1 %v688_v40  ;;  %830 = vmatpush2.msra.mxu0 %v688_v40  ;;  %v892_v40 = vld [vmem:[#allocation10 + $0x50] sm:$0xff] }
 0x30a   :  { %756 = vmatprep.subr.mxu1 %v687_v41  ;;  %831 = vmatprep.subr.mxu0 %v687_v41  ;;  %v907_v41 = vld [vmem:[#allocation10 + $0xc8] sm:$0xff] }
 0x30b   :  { %757 = vmatpush2.msra.mxu1 %v686_v42  ;;  %832 = vmatpush2.msra.mxu0 %v686_v42  ;;  %v891_v42 = vld [vmem:[#allocation10 + $0x48] sm:$0xff] }
 0x30c   :  { %758 = vmatprep.subr.mxu1 %v685_v43  ;;  %833 = vmatprep.subr.mxu0 %v685_v43  ;;  %v906_v43 = vld [vmem:[#allocation10 + $0xc0] sm:$0xff] }
 0x30d   :  { %759 = vmatpush2.msra.mxu1 %v684_v44  ;;  %834 = vmatpush2.msra.mxu0 %v684_v44  ;;  %v890_v44 = vld [vmem:[#allocation10 + $0x40] sm:$0xff] }
 0x30e   :  { %760 = vmatprep.subr.mxu1 %v683_v45  ;;  %835 = vmatprep.subr.mxu0 %v683_v45  ;;  %v905_v45 = vld [vmem:[#allocation10 + $0xb8] sm:$0xff] }
 0x30f   :  { %761 = vmatpush2.msra.mxu1 %v682_v46  ;;  %836 = vmatpush2.msra.mxu0 %v682_v46  ;;  %v889_v46 = vld [vmem:[#allocation10 + $0x38] sm:$0xff] }
 0x310   :  { %762 = vmatprep.subr.mxu1 %v681_v47  ;;  %837 = vmatprep.subr.mxu0 %v681_v47  ;;  %v904_v47 = vld [vmem:[#allocation10 + $0xb0] sm:$0xff] }
 0x311   :  { %763 = vmatpush2.msra.mxu1 %v680_v48  ;;  %838 = vmatpush2.msra.mxu0 %v680_v48  ;;  %v888_v48 = vld [vmem:[#allocation10 + $0x30] sm:$0xff] }
 0x312   :  { %764 = vmatprep.subr.mxu1 %v679_v49  ;;  %839 = vmatprep.subr.mxu0 %v679_v49  ;;  %v903_v49 = vld [vmem:[#allocation10 + $0xa8] sm:$0xff] }
 0x313   :  { %765 = vmatpush2.msra.mxu1 %v678_v50  ;;  %840 = vmatpush2.msra.mxu0 %v678_v50  ;;  %v887_v50 = vld [vmem:[#allocation10 + $0x28] sm:$0xff] }
 0x314   :  { %766 = vmatprep.subr.mxu1 %v677_v52  ;;  %841 = vmatprep.subr.mxu0 %v677_v52  ;;  %v902_v52 = vld [vmem:[#allocation10 + $0xa0] sm:$0xff] }
 0x315   :  { %767 = vmatpush2.msra.mxu1 %v676_v53  ;;  %842 = vmatpush2.msra.mxu0 %v676_v53  ;;  %v886_v53 = vld [vmem:[#allocation10 + $0x20] sm:$0xff] }
 0x316   :  { %768 = vmatprep.subr.mxu1 %v675_v54  ;;  %843 = vmatprep.subr.mxu0 %v675_v54  ;;  %v901_v54 = vld [vmem:[#allocation10 + $0x98] sm:$0xff] }
 0x317   :  { %769 = vmatpush2.msra.mxu1 %v674_v55  ;;  %844 = vmatpush2.msra.mxu0 %v674_v55  ;;  %v885_v55 = vld [vmem:[#allocation10 + $0x18] sm:$0xff] }
 0x318   :  { %1066 = vmatprep.subr.mxu1 %v913_v22 }
 0x398   :  { %v550_v62 = vpop.f32.mrf.mxu1  ;;  %v621_v10 = vpop.f32.mrf.mxu0 }
 0x399   :  { %v551_v63 = vadd.f32 %v550_v62, %v467_v61  ;;  %v622_v19 = vadd.f32 %v621_v10, %v475_v13  ;;  %v883_v61 = vld [vmem:[#allocation10 + $0x8] sm:$0xff]  ;;  %v882_v62 = vld [vmem:[#allocation10] sm:$0xff] }
 0x39a   :  { %v552_v1 = vpop.f32.mrf.mxu1  ;;  %v623_v14 = vpop.f32.mrf.mxu0 }
 0x39b   :  { %v1012_v2 = vmul.f32 -1.442695, %v551_v63  ;;  %v553_v0 = vadd.f32 %v552_v1, %v471_v51  ;;  %v624_v18 = vadd.f32 %v623_v14, %v479_v11  ;;  %v898_v51 = vld [vmem:[#allocation10 + $0x80] sm:$0xff] }
 0x39d   :  { %1224 = vpow2.f32 %v1012_v2  ;;  %v1013_v3 = vmul.f32 -1.442695, %v553_v0 }
 0x39f   :  { %1226 = vpow2.f32 %v1013_v3  ;;  %v133_v3 = vld [vmem:[%s1649_s8] ss:$2 sm:$0x3] }
 0x3aa   :  { %v1225_v4 = vpop.eup %1224 }
 0x3ab   :  { %v632_v5 = vadd.f32 1.0, %v1225_v4 }
 0x3ac   :  { %v1227_v6 = vpop.eup %1226 }
 0x3ad   :  { %1228 = vrcp.f32 %v632_v5  ;;  %v633_v7 = vadd.f32 1.0, %v1227_v6  ;;  %v860_v5 = vrot.slane %v133_v3, %v1605_v58  ;;  %v1008_v6 = vld [vmem:[%s1649_s8 + $0x1] ss:$2 sm:$0x3] }
 0x3ae   :  { %v877_v11 = vrot.slane %v1008_v6, %v1610_v60 }
 0x3af   :  { %1230 = vrcp.f32 %v633_v7  ;;  %v864_v7 = vrot.slane %v133_v3, %v1610_v60 }
 0x3ba   :  { %v1229_v12 = vpop.eup %1228 }
 0x3bb   :  { %v638_v16 = vmul.f32 %v1229_v12, %v551_v63  ;;  %v873_v12 = vrot.slane %v1008_v6, %v1605_v58 }
 0x3bc   :  { %v1231_v15 = vpop.eup %1230 }
 0x3bd   :  { %v639_v17 = vmul.f32 %v1231_v15, %v553_v0  ;;  %v640_v21 = vmul.f32 %v638_v16, %v622_v19 }
 0x3bf   :  { %v641_v20 = vmul.f32 %v639_v17, %v624_v18  ;;  %v1014_v18 = vld [vmem:[%s1648_s7 + $0x3] ss:$0 sm:$0xff] }
 0x3c1   :  { %770 = vmatprep.mubr.f32.mxu1 %v641_v20 }
 0x3c2   :  { %771 = vmatmul.mubr.f32.vlgmr.msra.gmra.mxu1 %v640_v21 }
 0x3c3   :  { %1067 = vmatpush3.msra.mxu1 %v897_v23 }
 0x3c4   :  { %1068 = vmatprep.subr.mxu1 %v912_v24 }
 0x3c5   :  { %1069 = vmatpush3.msra.mxu1 %v896_v25 }
 0x3c6   :  { %1070 = vmatprep.subr.mxu1 %v911_v26 }
 0x3c7   :  { %1071 = vmatpush3.msra.mxu1 %v895_v27 }
 0x3c8   :  { %1072 = vmatprep.subr.mxu1 %v910_v34 }
 0x3c9   :  { %1073 = vmatpush3.msra.mxu1 %v894_v35 }
 0x3ca   :  { %1074 = vmatprep.subr.mxu1 %v909_v36 }
 0x3cb   :  { %1075 = vmatpush3.msra.mxu1 %v893_v37 }
 0x3cc   :  { %1076 = vmatprep.subr.mxu1 %v908_v38 }
 0x3cd   :  { %1077 = vmatpush3.msra.mxu1 %v892_v40 }
 0x3ce   :  { %1078 = vmatprep.subr.mxu1 %v907_v41 }
 0x3cf   :  { %1079 = vmatpush3.msra.mxu1 %v891_v42 }
 0x3d0   :  { %1080 = vmatprep.subr.mxu1 %v906_v43 }
 0x3d1   :  { %1081 = vmatpush3.msra.mxu1 %v890_v44 }
 0x3d2   :  { %1082 = vmatprep.subr.mxu1 %v905_v45 }
 0x3d3   :  { %1083 = vmatpush3.msra.mxu1 %v889_v46 }
 0x3d4   :  { %1084 = vmatprep.subr.mxu1 %v904_v47 }
 0x3d5   :  { %1085 = vmatpush3.msra.mxu1 %v888_v48 }
 0x3d6   :  { %1086 = vmatprep.subr.mxu1 %v903_v49 }
 0x3d7   :  { %1087 = vmatpush3.msra.mxu1 %v887_v50 }
 0x3d8   :  { %1088 = vmatprep.subr.mxu1 %v902_v52 }
 0x3d9   :  { %1089 = vmatpush3.msra.mxu1 %v886_v53 }
 0x3da   :  { %1090 = vmatprep.subr.mxu1 %v901_v54 }
 0x3db   :  { %1091 = vmatpush3.msra.mxu1 %v885_v55 }
 0x3dc   :  { %1092 = vmatprep.subr.mxu1 %v900_v56 }
 0x3dd   :  { %1093 = vmatpush3.msra.mxu1 %v884_v57 }
 0x3de   :  { %1094 = vmatprep.subr.mxu1 %v899_v59 }
 0x3df   :  { %1095 = vmatpush3.msra.mxu1 %v883_v61 }
 0x3e0   :  { %1096 = vmatprep.subr.mxu1 %v898_v51 }
 0x3e1   :  { %1097 = vmatpush3.msra.mxu1 %v882_v62 }
 0x482   :  { %v772_v28 = vpop.f32.mrf.mxu1 }
 0x483   :  { %v1614_v29 = vsub.f32 %v640_v21, %v772_v28 }
 0x484   :  { %v774_v30 = vpop.f32.mrf.mxu1 }
 0x485   :  { %v1616_v31 = vsub.f32 %v641_v20, %v774_v30  ;;  %v779_v33 = vmul.f32 %v1614_v29, %v1614_v29 }
 0x487   :  { %v780_v32 = vmul.f32 %v1616_v31, %v1616_v31 }
 0x489   :  { %845 = vmatprep.mubr.f32.mxu0 %v780_v32 }
 0x48a   :  { %846 = vmatmul.mubr.f32.vlgmr.msra.gmra.mxu0 %v779_v33 }
 0x54a   :  { %v847_v63 = vpop.f32.mrf.mxu0 }
 0x54b   :  { %v848_v1 = vadd.f32 1e-06, %v847_v63 }
 0x54c   :  { %v849_v2 = vpop.f32.mrf.mxu0 }
 0x54d   :  { %1232 = vrsqrt.f32 %v848_v1  ;;  %v850_v0 = vadd.f32 1e-06, %v849_v2 }
 0x54f   :  { %1234 = vrsqrt.f32 %v850_v0 }
 0x55a   :  { %v1233_v4 = vpop.eup %1232 }
 0x55b   :  { %v854_v8 = vmul.f32 %v1233_v4, %v1614_v29 }
 0x55c   :  { %v1235_v9 = vpop.eup %1234 }
 0x55d   :  { %v855_v10 = vmul.f32 %v1235_v9, %v1616_v31  ;;  %v867_v13 = vmul.f32 %v860_v5, %v854_v8 }
 0x55f   :  { %v868_v14 = vmul.f32 %v864_v7, %v855_v10  ;;  %v880_v16 = vadd.f32 %v873_v12, %v867_v13 }
 0x561   :  { %v881_v15 = vadd.f32 %v877_v11, %v868_v14 }
 0x563   :  { %982 = vmatprep.mubr.f32.mxu1 %v881_v15 }
 0x564   :  { %983 = vmatmul.mubr.f32.vlgmr.msra.gmra.mxu1 %v880_v16 }
 0x624   :  { %v1098_v17 = vpop.f32.mrf.mxu1 }
 0x626   :  { %v1099_v19 = vpop.f32.mrf.mxu1 }
 0x627   :  { %v1100_v20 = vadd.f32 %v1099_v19, %v1098_v17 }
 0x629   :  { %v985_v21 = vadd.f32 %v1100_v20, %v1014_v18 }
 0x62b   :  { %v988_v60 = vadd.f32 %v985_v21, %v1588_v39 }
 0x62d   :  { %989 = vst [vmem:[#allocation14] sm:$0xf] %v988_v60 }
 0x62e   :  { %1387 = shalt.err (!%p1384_p11)
}
 0x62f   :  { %999 = dma.vmem_to_hbm [thread:$0]  %s997_s18, 64, %s1651_s10, [#allocation4]  }
 0x630   :  { %1404 = dma.done.wait [#allocation4], 64  }
 0x631   :  { %1405 = vsyncadd [#allocation4], 4294967232 }
 0x632   :  { %1003 = vsyncpa [#allocation3], 1 }
 0x633   :  { %1004 = vsyncpa [#allocation6], 1 }
 0x634   :  { %1005 = vsyncpa [#allocation9], 1 }
 0x635   :  { %1006 = vsyncpa [#allocation12], 1 }
 0x636   :  { %1007 = vsyncpa [#allocation4], 1 }

</bundles_post_ra>
